<compile_context>
chip_gen: v7x
topology: tpu7x:2x2x1
jax: 0.10.0
libtpu: 0.0.40
codegen_flags: <defaults>
</compile_context>

<pallas_src>
import functools
import math

import jax
import jax.numpy as jnp
from jax.experimental import pallas as pl
from jax.experimental.pallas import tpu as pltpu


def _add_margin_kernel(m, x_ref, wT_ref, label_ref, s_ref, o_ref):
    """Computes one (TILE_B, TILE_C) tile of s * (x @ normalize(W).T - m*one_hot)."""
    x = x_ref[...]            # (TB, D)  f32
    wT = wT_ref[...]          # (D, TC)  f32  (column c == class c of original W)
    lbl = label_ref[...]      # (TB, 1)  i32
    s = s_ref[0]              # learned scalar norm, in SMEM

    # Inverse L2 norm of each class row of the original (C, D) weight
    # == inverse column norm of wT.  max(sum_sq, 1e-24) == max(||w||, 1e-12)^2,
    # matching F.normalize's clamp.  rsqrt runs on the otherwise-idle EUP slot.
    sum_sq = jnp.sum(wT * wT, axis=0, keepdims=True)          # (1, TC) f32
    inv_norm = jax.lax.rsqrt(jnp.maximum(sum_sq, 1e-24))      # (1, TC) f32

    # Raw (un-normalized) logits on the MXU in bf16 with f32 accumulation; the
    # normalization is applied to the (TB, TC) result instead of to the (D, TC)
    # weight tile (no second weight-sized buffer, D*TC divides -> TB*TC muls).
    raw = jnp.dot(x.astype(jnp.bfloat16), wT.astype(jnp.bfloat16),
                  preferred_element_type=jnp.float32)         # (TB, TC) f32
    cosine = raw * inv_norm                                   # lane-broadcast

    # One-hot against GLOBAL class ids (class dim is tiled on grid axis 0).
    tb, tc = cosine.shape
    col0 = pl.program_id(0) * tc
    col_ids = col0 + jax.lax.broadcasted_iota(jnp.int32, (tb, tc), 1)
    one_hot = col_ids == lbl                                  # (TB, TC) bool

    out = jnp.where(one_hot, cosine - m, cosine)
    o_ref[...] = (s * out).astype(o_ref.dtype)


def add_margin_product(x, weight, label, s, m, *, tile_b=128, tile_c=256):
    """AddMarginProduct forward.

    x:      (B, D) float32 input features
    weight: (C, D) float32 (PyTorch nn.Linear layout)
    label:  (B,)   integer class indices
    s:      scalar (learned norm), m: python float margin
    returns (B, C) float32
    """
    B, D = x.shape
    C, D2 = weight.shape
    assert D == D2, "weight must be (out_features, in_features)"

    tile_b = min(tile_b, B)
    tile_c = min(tile_c, C)
    assert B % tile_b == 0, "batch must be divisible by tile_b (pad if needed)"
    assert C % tile_c == 0, "out_features must be divisible by tile_c (pad if needed)"
    if tile_b != B:
        assert tile_b % 8 == 0
    if tile_c != C:
        assert tile_c % 128 == 0

    # One-time layout change so the kernel never transposes: (C, D) -> (D, C).
    # TODO(synk): in a real model store the classifier weight as (D, C) (and in
    # bf16) in HBM to avoid this transpose and halve the dominant weight stream.
    wT = weight.T
    label2d = label.astype(jnp.int32).reshape(B, 1)
    s_arr = jnp.asarray(s, dtype=jnp.float32).reshape(1)

    n_c = C // tile_c
    n_b = B // tile_b

    # Double-buffered tiles (weight is the big stream) + headroom.
    vmem_bytes = 2 * 4 * (D * tile_c + tile_b * D + tile_b * tile_c) + (2 << 20)
    vmem_bytes = int(min(max(vmem_bytes, 16 << 20), 64 << 20))

    kernel = functools.partial(_add_margin_kernel, float(m))
    return pl.pallas_call(
        kernel,
        out_shape=jax.ShapeDtypeStruct((B, C), jnp.float32),
        # Class tiles OUTER, batch tiles INNER: weight block index is constant
        # across the inner axis -> one weight DMA per class tile.
        grid=(n_c, n_b),
        in_specs=[
            pl.BlockSpec((tile_b, D), lambda ci, bi: (bi, 0)),      # x
            pl.BlockSpec((D, tile_c), lambda ci, bi: (0, ci)),      # weight^T
            pl.BlockSpec((tile_b, 1), lambda ci, bi: (bi, 0)),      # labels
            pl.BlockSpec(memory_space=pltpu.MemorySpace.SMEM),      # s scalar
        ],
        out_specs=pl.BlockSpec((tile_b, tile_c), lambda ci, bi: (bi, ci)),
        compiler_params=pltpu.CompilerParams(
            dimension_semantics=("parallel", "parallel"),
            vmem_limit_bytes=vmem_bytes,
        ),
    )(x, wT, label2d, s_arr)


if __name__ == "__main__":
    # Small but tiling-exercising config: grid = (C//tile_c, B//tile_b) = (2, 2).
    in_features = 256
    out_features = 512
    batch = 256
    s_val = 30.0
    m_val = 0.35

    key = jax.random.PRNGKey(0)
    kx, kw, kl = jax.random.split(key, 3)

    # nn.init.kaiming_uniform_(a=sqrt(5)) -> bound = 1/sqrt(fan_in)
    bound = 1.0 / math.sqrt(in_features)
    weight = jax.random.uniform(
        kw, (out_features, in_features), jnp.float32, minval=-bound, maxval=bound
    )
    x = jax.random.normal(kx, (batch, in_features), jnp.float32)
    label = jax.random.randint(kl, (batch,), 0, out_features, jnp.int32)

    out = add_margin_product(x, weight, label, s_val, m_val)
    out = jax.block_until_ready(out)
    assert out.shape == (batch, out_features)

    one_hot = jax.nn.one_hot(label, out_features, dtype=jnp.float32)

    # Reference A: exact module semantics in f32 (sanity check on structure;
    # looser tol because the kernel's matmul is bf16 on the MXU).
    w_n = weight / jnp.maximum(jnp.linalg.norm(weight, axis=1, keepdims=True), 1e-12)
    cos_f32 = x @ w_n.T
    ref_f32 = s_val * (one_hot * (cos_f32 - m_val) + (1.0 - one_hot) * cos_f32)
    assert jnp.allclose(out, ref_f32, atol=1.0, rtol=0.0), \
        float(jnp.max(jnp.abs(out - ref_f32)))

    # Reference B: same math with the kernel's precision choices (bf16 matmul,
    # post-hoc rsqrt column scaling) — tight check of margin/one-hot/normalize.
    inv_norm = jax.lax.rsqrt(jnp.maximum(jnp.sum(weight * weight, axis=1), 1e-24))
    raw_bf = jnp.dot(x.astype(jnp.bfloat16), weight.T.astype(jnp.bfloat16),
                     preferred_element_type=jnp.float32)
    cos_bf = raw_bf * inv_norm[None, :]
    ref_bf = s_val * (one_hot * (cos_bf - m_val) + (1.0 - one_hot) * cos_bf)
    assert jnp.allclose(out, ref_bf, atol=1e-2, rtol=1e-2), \
        float(jnp.max(jnp.abs(out - ref_bf)))

    print("KERNEL_OK")
</pallas_src>

<mosaic_0001>
module attributes {stable_mosaic.version = 11 : i64} {
  func.func @_add_margin_kernel(%arg0: i32, %arg1: i32, %arg2: memref<128x256xf32, #tpu.memory_space<vmem>>, %arg3: memref<256x256xf32, #tpu.memory_space<vmem>>, %arg4: memref<128x1xi32, #tpu.memory_space<vmem>>, %arg5: memref<1xf32, #tpu.memory_space<smem>>, %arg6: memref<128x256xf32, #tpu.memory_space<vmem>>) attributes {dimension_semantics = [#tpu.dimension_semantics<parallel>, #tpu.dimension_semantics<parallel>], iteration_bounds = array<i64: 2, 2>, scalar_prefetch = 0 : i64, scratch_operands = 0 : i64, tpu.core_type = #tpu.core_type<tc>, window_params = [{transform_indices = @transform_0, window_bounds = array<i64: 128, 256>}, {transform_indices = @transform_1, window_bounds = array<i64: 256, 256>}, {transform_indices = @transform_2, window_bounds = array<i64: 128, 1>}, {transform_indices = @transform_3, window_bounds = array<i64: 1>}, {transform_indices = @transform_4, window_bounds = array<i64: 128, 256>}]} {
    %c0 = arith.constant 0 : index
    %c0_0 = arith.constant 0 : index
    %0 = vector.load %arg2[%c0, %c0_0] : memref<128x256xf32, #tpu.memory_space<vmem>>, vector<128x256xf32>
    %c0_1 = arith.constant 0 : index
    %c0_2 = arith.constant 0 : index
    %1 = vector.load %arg3[%c0_1, %c0_2] : memref<256x256xf32, #tpu.memory_space<vmem>>, vector<256x256xf32>
    %c0_3 = arith.constant 0 : index
    %c0_4 = arith.constant 0 : index
    %2 = vector.load %arg4[%c0_3, %c0_4] : memref<128x1xi32, #tpu.memory_space<vmem>>, vector<128x1xi32>
    %c0_5 = arith.constant 0 : index
    %3 = memref.load %arg5[%c0_5] : memref<1xf32, #tpu.memory_space<smem>>
    %4 = arith.mulf %1, %1 : vector<256x256xf32>
    %cst = arith.constant dense<0.000000e+00> : vector<256xf32>
    %5 = vector.multi_reduction <add>, %4, %cst [0] : vector<256x256xf32> to vector<256xf32>
    %6 = vector.shape_cast %5 : vector<256xf32> to vector<1x256xf32>
    %cst_6 = arith.constant 1.000000e-24 : f32
    %7 = vector.broadcast %cst_6 : f32 to vector<1x256xf32>
    %8 = arith.maximumf %6, %7 : vector<1x256xf32>
    %9 = math.rsqrt %8 : vector<1x256xf32>
    %10 = arith.truncf %0 : vector<128x256xf32> to vector<128x256xbf16>
    %11 = arith.truncf %1 : vector<256x256xf32> to vector<256x256xbf16>
    %cst_7 = arith.constant dense<0.000000e+00> : vector<128x256xf32>
    %12 = tpu.matmul %10, %11, %cst_7 {dimension_numbers = #tpu.dot_dimension_numbers<[1], [0], [0], [1], [0, 0, 1, 1], [], []>} : vector<128x256xbf16>, vector<256x256xbf16>, vector<128x256xf32> -> vector<128x256xf32>
    %13 = vector.broadcast %9 : vector<1x256xf32> to vector<128x256xf32>
    %14 = arith.mulf %12, %13 : vector<128x256xf32>
    %c256_i32 = arith.constant 256 : i32
    %15 = arith.muli %arg0, %c256_i32 : i32
    %16 = tpu.iota {dimensions = array<i32: 1>} : vector<128x256xi32>
    %17 = vector.broadcast %15 : i32 to vector<128x256xi32>
    %18 = arith.addi %17, %16 : vector<128x256xi32>
    %19 = vector.broadcast %2 : vector<128x1xi32> to vector<128x256xi32>
    %20 = arith.cmpi eq, %18, %19 : vector<128x256xi32>
    %cst_8 = arith.constant 3.500000e-01 : f32
    %21 = vector.broadcast %cst_8 : f32 to vector<128x256xf32>
    %22 = arith.subf %14, %21 : vector<128x256xf32>
    %23 = arith.select %20, %22, %14 : vector<128x256xi1>, vector<128x256xf32>
    %24 = vector.broadcast %3 : f32 to vector<128x256xf32>
    %25 = arith.mulf %24, %23 : vector<128x256xf32>
    %c0_9 = arith.constant 0 : index
    %c0_10 = arith.constant 0 : index
    %26 = vector.load %arg6[%c0_9, %c0_10] : memref<128x256xf32, #tpu.memory_space<vmem>>, vector<128x256xf32>
    tpu.vector_store %arg6[%c0_9, %c0_10], %25 {strides = array<i32>} : memref<128x256xf32, #tpu.memory_space<vmem>>, vector<128x256xf32>,
    return
  }
  func.func @transform_0(%arg0: i32, %arg1: i32) -> (i32, i32) {
    %c0_i32 = arith.constant 0 : i32
    %c0_i32_0 = arith.constant 0 : i32
    return %arg1, %c0_i32 : i32, i32
  }
  func.func @transform_1(%arg0: i32, %arg1: i32) -> (i32, i32) {
    %c0_i32 = arith.constant 0 : i32
    %c0_i32_0 = arith.constant 0 : i32
    return %c0_i32, %arg0 : i32, i32
  }
  func.func @transform_2(%arg0: i32, %arg1: i32) -> (i32, i32) {
    %c0_i32 = arith.constant 0 : i32
    %c0_i32_0 = arith.constant 0 : i32
    return %arg1, %c0_i32 : i32, i32
  }
  func.func @transform_3(%arg0: i32, %arg1: i32) -> i32 {
    %c0_i32 = arith.constant 0 : i32
    %c0_i32_0 = arith.constant 0 : i32
    return %c0_i32 : i32
  }
  func.func @transform_4(%arg0: i32, %arg1: i32) -> (i32, i32) {
    %c0_i32 = arith.constant 0 : i32
    return %arg1, %arg0 : i32, i32
  }
}

</mosaic_0001>

<bundles_post_ra>
// kernel: tpu_custom_call.1
= control target key start
LH: loop header
LB: loop body
LE: loop exit
PB: predicated region body
PF: predicated region fallthrough
CT: control target
= control target key end

     0   :  { %s2355_s0 = inlined_call_operand.hbm [shape: f32[256,256], index: 0, kind: input, shape index: {}]   ;;  %s2356_s1 = inlined_call_operand.hbm [shape: f32[256,512], index: 1, kind: input, shape index: {}]   ;;  %s2357_s2 = inlined_call_operand.vmem [shape: s32[256,1], index: 2, kind: input, shape index: {}]   ;;  %s2358_s3 = inlined_call_operand.<no memory space> [shape: f32[1], index: 3, kind: input, shape index: {}]   ;;  %s2359_s4 = inlined_call_operand.hbm [shape: f32[256,512], index: 4, kind: output, shape index: {}]  }
   0x1   :  { %2371 = sst [smem:[#allocation17_spill]] %s2355_s0 }
   0x2   :  { %2372 = sst [smem:[#allocation18_spill]] %s2359_s4 }
   0x3   :  { %9 = sst [smem:[#allocation2]] %s2358_s3 }
   0x4   :  { %10 = vsyncpa [#allocation4], 0 }
   0x5   :  { %12 = vsyncpa [#allocation4 + $0x1], 0 }
   0x6   :  { %13 = vsyncpa [#allocation7], 0 }
   0x7   :  { %15 = vsyncpa [#allocation7 + $0x1], 0 }
   0x8   :  { %16 = vsyncpa [#allocation5], 0 }
   0x9   :  { %18 = vsyncpa [#allocation5 + $0x1], 0  ;;  %s1588_s17 = smov 0   ;;  %s1590_s18 = smov 0  }
   0xa   :  { %s1592_s19 = smov 0   ;;  %s1594_s20 = smov 0  }
   0xb   :  { %s1596_s21 = smov 0   ;;  %s1598_s22 = smov 0  }
   0xc   :  { %s1600_s23 = smov 0   ;;  %s1602_s3 = smov 0  }
   0xd   :  { %s1604_s24 = smov 0   ;;  %s1606_s25 = smov 0  }
   0xe   :  { %s1608_s26 = smov 0   ;;  %s1610_s27 = smov 0  }
   0xf   :  { %s1612_s28 = smov 0   ;;  %s1614_s29 = smov 0  }
  0x10 LB: > { %2373 = sst [smem:[#allocation12_spill]] %s1540_s27  ;;  %s1101_s30 = sadd.s32 4294967295, %s1548_s29   ;;  %s1548_s29 = sphi %s1614_s29, %s24_s29   ;;  %s1544_s28 = sphi %s1612_s28, %s2415_s28   ;;  %s1540_s27 = sphi %s1610_s27, %s2403_s27   ;;  %s1536_s26 = sphi %s1608_s26, %s2414_s26   ;;  %s1532_s25 = sphi %s1606_s25, %s2402_s25   ;;  %s1528_s24 = sphi %s1604_s24, %s2413_s24   ;;  %s1524_s3 = sphi %s1602_s3, %s2412_s3   ;;  %s1520_s23 = sphi %s1600_s23, %s2411_s23   ;;  %s1516_s22 = sphi %s1598_s22, %s2410_s22   ;;  %s1512_s21 = sphi %s1596_s21, %s2409_s21   ;;  %s1508_s20 = sphi %s1594_s20, %s2408_s20   ;;  %s1504_s19 = sphi %s1592_s19, %s2407_s19   ;;  %s1500_s18 = sphi %s1590_s18, %s2406_s18   ;;  %s1496_s17 = sphi %s1588_s17, %s2405_s17  }
  0x11   : > { %s1102_s5 = sadd.s32 4294967294, %s1548_s29   ;;  %s33_s6 = sadd.s32 1, %s1540_s27 }
  0x12   : > { %s36_s7 = sadd.s32 1, %s1544_s28  ;;  %p34_p0 = scmp.ge.s32.totalorder %s33_s6, 2 }
  0x13   : > { %s43_s8 = sadd.s32 1, %s1528_s24  ;;  %p50_p1 = scmp.ne.s32.totalorder %s1528_s24, %s1524_s3 }
  0x14   : > { %p2365_p2 = scmp.eq.s32.totalorder %s1548_s29, 0  ;;  %s2417_s6 = smov (%p34_p0, %s33_s6), 0 }
  0x15   : > { %2374 = sst [smem:[#allocation13_spill]] %s2417_s6  ;;  %s2419_s7 = smov (!%p34_p0, %s36_s7), %s1544_s28 }
  0x16   : > { %s40_s9 = ssub.s32 %s1540_s27, %s2417_s6  ;;  %p1671_p3 = por %p2365_p2, %p50_p1 }
  0x17   : > { %p38_p4 = scmp.ge.s32.totalorder %s2419_s7, 2  ;;  %p41_p5 = scmp.eq.s32.totalorder %s40_s9, 0 }
  0x18   : > { %p56_p6 = scmp.ne.s32.totalorder %s1524_s3, %s1520_s23  ;;  %p1676_p7 = scmp.eq.s32.totalorder %s1101_s30, 0 }
  0x19   : > { %s2421_s7 = smov (%p38_p4, %s2419_s7), 0  ;;  %s144_s16 = sadd.s32 1, %s1504_s19 }
  0x1a   : > { %2377 = sst [smem:[#allocation14_spill]] %s2421_s7  ;;  %p1687_p8 = por %p1676_p7, %p56_p6 }
  0x1b   : > { %s1683_s12 = scalar_select %p41_p5, %s1528_s24, %s43_s8  }
  0x1c   : > { %s2379_s13 = scalar_select %p1687_p8, 1, 0 }
  0x1d   : > { %2378 = sst [smem:[#allocation15_spill]] %s1683_s12  ;;  %s1693_s14 = ssub.s32 %s1544_s28, %s2421_s7 }
  0x1e   : > { %s141_s15 = sor.u32 %s1693_s14, %s40_s9  ;;  %p154_p11 = scmp.ne.s32.totalorder %s1504_s19, %s1500_s18 }
  0x1f   : > { %p142_p10 = scmp.eq.s32.totalorder %s141_s15, 0  ;;  %p155_p12 = scmp.eq.s32.totalorder %s1101_s30, 3 }
  0x20   : > { %p160_p0 = scmp.ne.s32.totalorder %s1500_s18, %s1496_s17  ;;  %p161_p1 = scmp.eq.s32.totalorder %s1102_s5, 3 }
  0x21   : > { %s1701_s23 = scalar_select %p142_p10, %s1504_s19, %s144_s16  }
  0x22   : > { %p1703_p13 = por %p155_p12, %p154_p11  ;;  %p2364_p4 = scmp.lt.s32.totalorder %s1548_s29, 4 }
  0x23   : > { %2380 = sst [smem:[#allocation16_spill]] %s1701_s23  ;;  %s184_s7 = sand.u32 1, %s1528_s24  }
  0x24   : > { %s2381_s8 = scalar_select %p1703_p13, 1, 0 }
  0x25   : > { %p1711_p5 = por %p161_p1, %p160_p0  ;;  %s1105_s9 = sshll.u32 %s184_s7, 8 }
  0x26   : > { %s1159_s15 = sshll.u32 %s1540_s27, 12  ;;  %s2383_s0 = sld [smem:[#allocation17_spill]] }
  0x27   : > { %s2382_s6 = scalar_select %p1711_p5, 1, 0 }
  0x28   : > { %s188_s16 = scalar_lea.vmem [#allocation3], %s1105_s9  ;;  %p1725_p6 = pnand %p2364_p4, %p1671_p3 }
  0x29   : > { %s196_s23 = sshll.u32 %s188_s16, 4  ;;  %s1731_s27 = scalar_lea.sflag [#allocation4], %s184_s7  ;;  %s1729_s23 = int_to_ptr.vmem [resolvable:$true] %s196_s23 }
  0x2a   : > { %p1340_p11 = pneg %p1725_p6 }
  0x2c   : > { %s1719_s30 = scalar_lea.hbm %s2383_s0, %s1159_s15  ;;  %s1343_s9 = scalar_lea.hbm %s2383_s0, 8192 }
  0x2d   : > { %s1338_s4 = scalar_lea.hbm %s1719_s30, 4096  ;;  %p1344_p3 = scmp.lt.u32.totalorder %s1719_s30, %s2383_s0 }
  0x2e   : > { %p1339_p10 = scmp.ne.s32.totalorder %s1719_s30, %s1338_s4  ;;  %p1345_p1 = scmp.lt.u32.totalorder %s1343_s9, %s1338_s4 }
  0x2f   : > { %p1347_p2 = scmp.lt.u32.totalorder %s1338_s4, %s1719_s30 }
  0x30   : > { %p1341_p12 = pnand %p1340_p11, %p1339_p10  ;;  %p1346_p4 = por %p1345_p1, %p1344_p3 }
  0x32   : > { %p1342_p0 = pneg %p1341_p12  ;;  %p1348_p9 = por %p1347_p2, %p1346_p4 }
  0x34   : > { %p1349_p5 = pnand %p1348_p9, %p1342_p0 }
  0x36   : > { %1352 = shalt.err (!%p1349_p5)
}
  0x37   : > { %s1353_s7 = scalar_lea.vmem %s1729_s23, 4096  ;;  %s1550_s10 = smov [#allocation3]  }
  0x38   : > { %p1354_p10 = scmp.ne.s32.totalorder %s1729_s23, %s1353_s7  ;;  %s1358_s12 = sshll.u32 %s1550_s10, 4  ;;  %s1359_s12 = int_to_ptr.vmem [resolvable:$false] %s1358_s12 }
  0x39   : > { %s1360_s15 = scalar_lea.vmem %s1359_s12, 8192  ;;  %p1361_p8 = scmp.lt.s32.totalorder %s1729_s23, %s1359_s12 }
  0x3a   : > { %p1356_p12 = pnand %p1354_p10, %p1340_p11  ;;  %p1362_p3 = scmp.lt.s32.totalorder %s1360_s15, %s1353_s7 }
  0x3c   : > { %p1357_p13 = pneg %p1356_p12  ;;  %p1363_p1 = por %p1362_p3, %p1361_p8 }
  0x3e   : > { %p1364_p2 = pnand %p1363_p1, %p1357_p13 }
  0x40   : > { %1367 = shalt.err (!%p1364_p2)
}
  0x41   : > { %s2368_s4 = smov 256   ;;  %s2369_s9 = smov 16  }
  0x42   : > { %1203 = dma.hbm_to_vmem [thread:$0]  (!%p1725_p6), %s1719_s30, 4096, %s1729_s23, %s1731_s27, %s2368_s4, %s2368_s4, %s2369_s9  }
  0x43   : > { %p1112_p8 = scmp.ge.s32.totalorder %s1548_s29, 1  ;;  %p234_p9 = scmp.lt.s32.totalorder %s1548_s29, 5 }
  0x44   : > { %s69_s7 = sadd.s32 1, %s1516_s22  ;;  %p2386_p4 = scmp.eq.s32.totalorder %s1693_s14, 0 }
  0x45   : > { %p1764_p13 = pnand %p1112_p8, %p234_p9  ;;  %p76_p5 = scmp.ne.s32.totalorder %s1516_s22, %s1512_s21 }
  0x46   : > { %s1772_s10 = scalar_select %p2386_p4, %s1516_s22, %s69_s7  }
  0x47   : > { %p82_p11 = scmp.ne.s32.totalorder %s1512_s21, %s1508_s20  ;;  %s206_s12 = sand.u32 1, %s1516_s22  }
  0x48   : > { %s1160_s15 = sshll.u32 %s1544_s28, 8  ;;  %p2387_p0 = scmp.eq.s32.totalorder %s1548_s29, 0 }
  0x49   : > { %p1784_p12 = por %p82_p11, %p1676_p7  ;;  %s1109_s23 = sshll.u32 %s206_s12, 9 }
  0x4a   : > { %p78_p10 = por %p76_p5, %p2387_p0  ;;  %s1791_s4 = scalar_lea.hbm %s2356_s1, %s1160_s15 }
  0x4b   : > { %s2388_s27 = scalar_select %p1784_p12, 1, 0 }
  0x4c   : > { %s210_s20 = scalar_lea.vmem [#allocation6], %s1109_s23  ;;  %p2389_p6 = scmp.lt.s32.totalorder %s1548_s29, 4 }
  0x4d   : > { %s217_s14 = sshll.u32 %s210_s20, 4  ;;  %s1801_s11 = scalar_lea.sflag [#allocation7], %s206_s12  ;;  %s1799_s14 = int_to_ptr.vmem [resolvable:$true] %s217_s14 }
  0x4e   : > { %p1795_p3 = pnand %p2389_p6, %p78_p10  ;;  %s1368_s30 = scalar_lea.hbm %s1791_s4, 8192 }
  0x4f   : > { %p1369_p7 = scmp.ne.s32.totalorder %s1791_s4, %s1368_s30  ;;  %s1373_s5 = scalar_lea.hbm %s2356_s1, 16384 }
  0x50   : > { %p1370_p1 = pneg %p1795_p3  ;;  %p1374_p9 = scmp.lt.u32.totalorder %s1791_s4, %s2356_s1 }
  0x51   : > { %p1375_p4 = scmp.lt.u32.totalorder %s1373_s5, %s1368_s30  ;;  %p1377_p11 = scmp.lt.u32.totalorder %s1368_s30, %s1791_s4 }
  0x52   : > { %p1371_p2 = pnand %p1370_p1, %p1369_p7 }
  0x53   : > { %p1376_p5 = por %p1375_p4, %p1374_p9 }
  0x54   : > { %p1372_p8 = pneg %p1371_p2 }
  0x55   : > { %p1378_p0 = por %p1377_p11, %p1376_p5 }
  0x57   : > { %p1379_p10 = pnand %p1378_p0, %p1372_p8 }
  0x59   : > { %1382 = shalt.err (!%p1379_p10)
}
  0x5a   : > { %s1383_s12 = scalar_lea.vmem %s1799_s14, 8192  ;;  %s1553_s15 = smov [#allocation6]  }
  0x5b   : > { %p1384_p6 = scmp.ne.s32.totalorder %s1799_s14, %s1383_s12  ;;  %s1388_s23 = sshll.u32 %s1553_s15, 4  ;;  %s1389_s23 = int_to_ptr.vmem [resolvable:$false] %s1388_s23 }
  0x5c   : > { %s1390_s9 = scalar_lea.vmem %s1389_s23, 16384  ;;  %p1391_p12 = scmp.lt.s32.totalorder %s1799_s14, %s1389_s23 }
  0x5d   : > { %p1386_p7 = pnand %p1384_p6, %p1370_p1  ;;  %p1392_p9 = scmp.lt.s32.totalorder %s1390_s9, %s1383_s12 }
  0x5f   : > { %p1387_p2 = pneg %p1386_p7  ;;  %p1393_p4 = por %p1392_p9, %p1391_p12 }
  0x61   : > { %p1394_p5 = pnand %p1393_p4, %p1387_p2 }
  0x63   : > { %1397 = shalt.err (!%p1394_p5)
}
  0x64   : > { %s1554_s30 = smov 512   ;;  %s2391_s5 = smov 16  }
  0x65   : > { %s2392_s20 = smov 256   ;;  %238 = sbr.rel (%p1764_p13) target bundleno = 449 (0x1c1), region = 36 }
  0x66   : > { %1206 = dma.hbm_to_vmem [thread:$0]  (!%p1795_p3), %s1791_s4, 8192, %s1799_s14, %s1801_s11, %s1554_s30, %s2392_s20, %s2391_s5  }
  0x67   : > { %s240_s15 = sand.u32 (!%p1764_p13), 1, %s1524_s3   ;;  %p2393_p12 = scmp.ne.s32.totalorder (!%p1764_p13), %s2379_s13, 0 }
  0x68   : > { %s1113_s23 = sshll.u32 (!%p1764_p13), %s240_s15, 8  ;;  %s241_s12 = scalar_lea.sflag (!%p1764_p13), [#allocation4], %s240_s15 }
  0x69   : > { %s1834_s9 = scalar_lea.vmem (!%p1764_p13), [#allocation3], %s1113_s23 }
  0x6c   : > { %1483 = dma.done.wait (%p2393_p12), %s241_s12, 4096  }
  0x6d   : > { %1485 = vsyncadd (%p2393_p12), %s241_s12, 4294963200  ;;  %s249_s7 = sand.u32 1, %s1512_s21   ;;  %p2394_p13 = scmp.ne.s32.totalorder %s2388_s27, 0 }
  0x6e   : > { %s1114_s0 = sshll.u32 %s249_s7, 9  ;;  %s250_s4 = scalar_lea.sflag [#allocation7], %s249_s7 }
  0x6f   : > { %s1841_s14 = scalar_lea.vmem [#allocation6], %s1114_s0 }
  0x70   : > { %1487 = dma.done.wait (%p2394_p13), %s250_s4, 8192  }
  0x71   : > { %1489 = vsyncadd (%p2394_p13), %s250_s4, 4294959104  ;;  %v1555_v0 = vmov 0   ;;  %v331_v1 = vld [vmem:[%s1841_s14 + $0x8] sm:$0xff]  ;;  %v333_v2 = vld [vmem:[%s1841_s14 + $0x18] sm:$0xff]  ;;  %s1116_s0 = sshll.u32 %s1532_s25, 4  ;;  %s1118_s5 = sshll.u32 %s1536_s26, 8 }
  0x72   : > { %1333 = vset.pattern.permute.xlu1 %v1555_v0  ;;  %1332 = vset.pattern.permute.xlu0 %v1555_v0  ;;  %v330_v3 = vld [vmem:[%s1841_s14] sm:$0xff]  ;;  %v412_v4 = vmul.f32 %v331_v1, %v331_v1  ;;  %v414_v5 = vmul.f32 %v333_v2, %v333_v2  ;;  %v570_v6 = vpack.c.bf16 %v333_v2, %v331_v1  ;;  %v332_v7 = vld [vmem:[%s1841_s14 + $0x10] sm:$0xff]  ;;  %v335_v9 = vld [vmem:[%s1841_s14 + $0x28] sm:$0xff]  ;;  %p1876_p3 = scmp.lt.s32.totalorder %s1116_s0, 31  ;;  %s410_s20 = sld [smem:[#allocation2]] }
  0x73   : > { %v411_v8 = vmul.f32 %v330_v3, %v330_v3  ;;  %v337_v10 = vld [vmem:[%s1841_s14 + $0x38] sm:$0xff]  ;;  %v413_v11 = vmul.f32 %v332_v7, %v332_v7  ;;  %v569_v12 = vpack.c.bf16 %v332_v7, %v330_v3  ;;  %v416_v13 = vmul.f32 %v335_v9, %v335_v9  ;;  %v334_v15 = vld [vmem:[%s1841_s14 + $0x20] sm:$0xff]  ;;  %v336_v16 = vld [vmem:[%s1841_s14 + $0x30] sm:$0xff]  ;;  %s285_s15 = sand.u32 1, %s1500_s18   ;;  %s1161_s7 = sshll.u32 %s1532_s25, 6 }
  0x74   : > { %v418_v14 = vmul.f32 %v337_v10, %v337_v10  ;;  %v512_v17 = vadd.f32 %v414_v5, %v412_v4  ;;  %601 = vmatprep.subr.bf16.mxu0 %v570_v6  ;;  %1162 = vmatprep.subr.bf16.mxu1 %v570_v6  ;;  %v572_v18 = vpack.c.bf16 %v337_v10, %v335_v9  ;;  %v339_v20 = vld [vmem:[%s1841_s14 + $0x48] sm:$0xff]  ;;  %v341_v21 = vld [vmem:[%s1841_s14 + $0x58] sm:$0xff]  ;;  %v338_v27 = vld [vmem:[%s1841_s14 + $0x40] sm:$0xff]  ;;  %s2423_s0 = smov (!%p1876_p3, %s1116_s0), 31  ;;  %s2026_s23 = sshll.u32 %s285_s15, 8 }
  0x75   : > { %v415_v19 = vmul.f32 %v334_v15, %v334_v15  ;;  %v475_v22 = vadd.f32 %v413_v11, %v411_v8  ;;  %602 = vmatpush1.bf16.msra.mxu0 %v569_v12  ;;  %1178 = vmatpush1.bf16.msra.mxu1 %v569_v12  ;;  %v417_v23 = vmul.f32 %v336_v16, %v336_v16  ;;  %v340_v28 = vld [vmem:[%s1841_s14 + $0x50] sm:$0xff]  ;;  %v343_v32 = vld [vmem:[%s1841_s14 + $0x68] sm:$0xff]  ;;  %v345_v33 = vld [vmem:[%s1841_s14 + $0x78] sm:$0xff]  ;;  %s1117_s16 = sshll.u32 %s2423_s0, 3  ;;  %s2065_s12 = scalar_lea.vmem [#allocation8], %s2026_s23 }
  0x76   : > { %v571_v24 = vpack.c.bf16 %v336_v16, %v334_v15  ;;  %v513_v25 = vadd.f32 %v512_v17, %v416_v13  ;;  %603 = vmatprep.subr.bf16.mxu0 %v572_v18  ;;  %1163 = vmatprep.subr.bf16.mxu1 %v572_v18  ;;  %v420_v26 = vmul.f32 %v339_v20, %v339_v20  ;;  %v342_v42 = vld [vmem:[%s1841_s14 + $0x60] sm:$0xff]  ;;  %v344_v43 = vld [vmem:[%s1841_s14 + $0x70] sm:$0xff]  ;;  %v347_v46 = vld [vmem:[%s1841_s14 + $0x88] sm:$0xff]  ;;  %s1900_s30 = scalar_lea.vmem %s2357_s2, %s1117_s16  ;;  %s979_s4 = sshll.u32 %s2065_s12, 4  ;;  %s2272_s4 = int_to_ptr.vmem [resolvable:$true] %s979_s4 }
  0x77   : > { %v476_v29 = vadd.f32 %v475_v22, %v415_v19  ;;  %v574_v30 = vpack.c.bf16 %v341_v21, %v339_v20  ;;  %v419_v31 = vmul.f32 %v338_v27, %v338_v27  ;;  %v422_v35 = vmul.f32 %v341_v21, %v341_v21  ;;  %v349_v47 = vld [vmem:[%s1841_s14 + $0x98] sm:$0xff]  ;;  %v346_v56 = vld [vmem:[%s1841_s14 + $0x80] sm:$0xff]  ;;  %v348_v57 = vld [vmem:[%s1841_s14 + $0x90] sm:$0xff]  ;;  %s2396_s13 = sld [smem:[#allocation18_spill]]  ;;  %s2279_s27 = scalar_lea.sflag [#allocation5], %s285_s15 }
  0x78   : > { %v514_v34 = vadd.f32 %v513_v25, %v418_v14  ;;  %v421_v37 = vmul.f32 %v340_v28, %v340_v28  ;;  %v573_v38 = vpack.c.bf16 %v340_v28, %v338_v27  ;;  %v424_v40 = vmul.f32 %v343_v32, %v343_v32  ;;  %v351_v60 = vld [vmem:[%s1841_s14 + $0xa8] sm:$0xff]  ;;  %v353_v61 = vld [vmem:[%s1841_s14 + $0xb8] sm:$0xff]  ;;  %v350_v6 = vld [vmem:[%s1841_s14 + $0xa0] sm:$0xff]  ;;  %s1398_s11 = scalar_lea.vmem %s2272_s4, 4096  ;;  %p2397_p8 = scmp.ne.s32.totalorder %s2381_s8, 0 }
  0x79   : > { %v477_v36 = vadd.f32 %v476_v29, %v417_v23  ;;  %604 = vmatpush1.bf16.msra.mxu0 %v571_v24  ;;  %1179 = vmatpush1.bf16.msra.mxu1 %v571_v24  ;;  %v576_v41 = vpack.c.bf16 %v345_v33, %v343_v32  ;;  %v423_v45 = vmul.f32 %v342_v42, %v342_v42  ;;  %v352_v7 = vld [vmem:[%s1841_s14 + $0xb0] sm:$0xff]  ;;  %v355_v10 = vld [vmem:[%s1841_s14 + $0xc8] sm:$0xff]  ;;  %v357_v11 = vld [vmem:[%s1841_s14 + $0xd8] sm:$0xff]  ;;  %p1399_p1 = scmp.ne.s32.totalorder %s2272_s4, %s1398_s11 }
  0x7a   : > { %v515_v39 = vadd.f32 %v514_v34, %v420_v26  ;;  %605 = vmatprep.subr.bf16.mxu0 %v574_v30  ;;  %1164 = vmatprep.subr.bf16.mxu1 %v574_v30  ;;  %v426_v49 = vmul.f32 %v345_v33, %v345_v33  ;;  %v425_v51 = vmul.f32 %v344_v43, %v344_v43  ;;  %v354_v20 = vld [vmem:[%s1841_s14 + $0xc0] sm:$0xff]  ;;  %v356_v21 = vld [vmem:[%s1841_s14 + $0xd0] sm:$0xff]  ;;  %v359_v24 = vld [vmem:[%s1841_s14 + $0xe8] sm:$0xff] }
  0x7b   : > { %v478_v44 = vadd.f32 %v477_v36, %v419_v31  ;;  %v575_v52 = vpack.c.bf16 %v344_v43, %v342_v42  ;;  %v428_v54 = vmul.f32 %v347_v46, %v347_v46  ;;  %v578_v55 = vpack.c.bf16 %v349_v47, %v347_v46  ;;  %v361_v25 = vld [vmem:[%s1841_s14 + $0xf8] sm:$0xff]  ;;  %v358_v34 = vld [vmem:[%s1841_s14 + $0xe0] sm:$0xff]  ;;  %p1400_p11 = pnand %p1399_p1, %p2397_p8 }
  0x7c   : > { %v516_v48 = vadd.f32 %v515_v39, %v422_v35  ;;  %v427_v59 = vmul.f32 %v346_v56, %v346_v56  ;;  %v430_v63 = vmul.f32 %v349_v47, %v349_v47  ;;  %v429_v1 = vmul.f32 %v348_v57, %v348_v57  ;;  %v360_v35 = vld [vmem:[%s1841_s14 + $0xf0] sm:$0xff]  ;;  %v365_v39 = vld [vmem:[%s1841_s14 + $0x118] sm:$0xff] }
  0x7d   : > { %v479_v50 = vadd.f32 %v478_v44, %v421_v37  ;;  %606 = vmatpush1.bf16.msra.mxu0 %v573_v38  ;;  %1180 = vmatpush1.bf16.msra.mxu1 %v573_v38  ;;  %v577_v2 = vpack.c.bf16 %v348_v57, %v346_v56  ;;  %v432_v4 = vmul.f32 %v351_v60, %v351_v60  ;;  %v363_v38 = vld [vmem:[%s1841_s14 + $0x108] sm:$0xff]  ;;  %p1401_p0 = pneg %p1400_p11 }
  0x7e   : > { %v517_v53 = vadd.f32 %v516_v48, %v424_v40  ;;  %607 = vmatprep.subr.bf16.mxu0 %v576_v41  ;;  %1165 = vmatprep.subr.bf16.mxu1 %v576_v41  ;;  %v580_v5 = vpack.c.bf16 %v353_v61, %v351_v60  ;;  %v431_v9 = vmul.f32 %v350_v6, %v350_v6  ;;  %v362_v48 = vld [vmem:[%s1841_s14 + $0x100] sm:$0xff] }
  0x7f   : > { %v480_v58 = vadd.f32 %v479_v50, %v423_v45  ;;  %v434_v13 = vmul.f32 %v353_v61, %v353_v61  ;;  %v433_v15 = vmul.f32 %v352_v7, %v352_v7  ;;  %v579_v16 = vpack.c.bf16 %v352_v7, %v350_v6  ;;  %v394_v60 = vld [vmem:[%s1900_s30] sm:$0xff] }
  0x80   : > { %v518_v62 = vadd.f32 %v517_v53, %v426_v49  ;;  %v436_v18 = vmul.f32 %v355_v10, %v355_v10  ;;  %v582_v19 = vpack.c.bf16 %v357_v11, %v355_v10  ;;  %v435_v23 = vmul.f32 %v354_v20, %v354_v20  ;;  %v364_v49 = vld [vmem:[%s1841_s14 + $0x110] sm:$0xff]  ;;  %v369_v53 = vld [vmem:[%s1841_s14 + $0x138] sm:$0xff]  ;;  %754 = vperm.xlu0 %1332, %v394_v60  }
  0x81   : > { %v481_v0 = vadd.f32 %v480_v58, %v425_v51  ;;  %608 = vmatpush1.bf16.msra.mxu0 %v575_v52  ;;  %1181 = vmatpush1.bf16.msra.mxu1 %v575_v52  ;;  %v438_v27 = vmul.f32 %v357_v11, %v357_v11  ;;  %v437_v29 = vmul.f32 %v356_v21, %v356_v21  ;;  %v367_v52 = vld [vmem:[%s1841_s14 + $0x128] sm:$0xff]  ;;  %v397_v10 = vld [vmem:[%s1900_s30 + $0x18] sm:$0xff] }
  0x82   : > { %v519_v3 = vadd.f32 %v518_v62, %v428_v54  ;;  %609 = vmatprep.subr.bf16.mxu0 %v578_v55  ;;  %1166 = vmatprep.subr.bf16.mxu1 %v578_v55  ;;  %v581_v30 = vpack.c.bf16 %v356_v21, %v354_v20  ;;  %v440_v32 = vmul.f32 %v359_v24, %v359_v24  ;;  %v370_v20 = vld [vmem:[%s1841_s14 + $0x140] sm:$0xff]  ;;  %v372_v21 = vld [vmem:[%s1841_s14 + $0x150] sm:$0xff] }
  0x83   : > { %v482_v8 = vadd.f32 %v481_v0, %v427_v59  ;;  %v584_v33 = vpack.c.bf16 %v361_v25, %v359_v24  ;;  %v439_v37 = vmul.f32 %v358_v34, %v358_v34  ;;  %v442_v41 = vmul.f32 %v361_v25, %v361_v25  ;;  %v396_v59 = vld [vmem:[%s1900_s30 + $0x10] sm:$0xff]  ;;  %v366_v0 = vld [vmem:[%s1841_s14 + $0x120] sm:$0xff]  ;;  %v375_v24 = vld [vmem:[%s1841_s14 + $0x168] sm:$0xff] }
  0x84   : > { %v520_v12 = vadd.f32 %v519_v3, %v430_v63  ;;  %v441_v43 = vmul.f32 %v360_v35, %v360_v35  ;;  %v583_v44 = vpack.c.bf16 %v360_v35, %v358_v34  ;;  %v444_v46 = vmul.f32 %v363_v38, %v363_v38  ;;  %760 = vperm.xlu1 %1333, %v396_v59   ;;  %v377_v25 = vld [vmem:[%s1841_s14 + $0x178] sm:$0xff] }
  0x85   : > { %v483_v14 = vadd.f32 %v482_v8, %v429_v1  ;;  %610 = vmatpush1.bf16.msra.mxu0 %v577_v2  ;;  %1182 = vmatpush1.bf16.msra.mxu1 %v577_v2  ;;  %v586_v47 = vpack.c.bf16 %v365_v39, %v363_v38  ;;  %v443_v51 = vmul.f32 %v362_v48, %v362_v48  ;;  %v368_v1 = vld [vmem:[%s1841_s14 + $0x130] sm:$0xff]  ;;  %v299_v8 = vld [vmem:[%s1834_s9 + $0x8] sm:$0xff] }
  0x86   : > { %v521_v17 = vadd.f32 %v520_v12, %v432_v4  ;;  %611 = vmatprep.subr.bf16.mxu0 %v580_v5  ;;  %1167 = vmatprep.subr.bf16.mxu1 %v580_v5  ;;  %v446_v55 = vmul.f32 %v365_v39, %v365_v39  ;;  %v445_v57 = vmul.f32 %v364_v49, %v364_v49  ;;  %v371_v4 = vld [vmem:[%s1841_s14 + $0x148] sm:$0xff]  ;;  %v373_v5 = vld [vmem:[%s1841_s14 + $0x158] sm:$0xff]  ;;  %v376_v38 = vld [vmem:[%s1841_s14 + $0x170] sm:$0xff] }
  0x87   : > { %v484_v22 = vadd.f32 %v483_v14, %v431_v9  ;;  %v585_v58 = vpack.c.bf16 %v364_v49, %v362_v48  ;;  %v448_v62 = vmul.f32 %v367_v52, %v367_v52  ;;  %v588_v63 = vpack.c.bf16 %v369_v53, %v367_v52  ;;  %v301_v9 = vld [vmem:[%s1834_s9 + $0x18] sm:$0xff]  ;;  %v315_v14 = vld [vmem:[%s1834_s9 + $0x88] sm:$0xff] }
  0x88   : > { %v522_v26 = vadd.f32 %v521_v17, %v434_v13  ;;  %v447_v3 = vmul.f32 %v366_v0, %v366_v0  ;;  %v450_v7 = vmul.f32 %v369_v53, %v369_v53  ;;  %v449_v12 = vmul.f32 %v368_v1, %v368_v1  ;;  %763 = vperm.xlu1 %1333, %v397_v10   ;;  %v401_v49 = vld [vmem:[%s1900_s30 + $0x38] sm:$0xff]  ;;  %v378_v53 = vld [vmem:[%s1841_s14 + $0x180] sm:$0xff] }
  0x89   : > { %v485_v28 = vadd.f32 %v484_v22, %v433_v15  ;;  %612 = vmatpush1.bf16.msra.mxu0 %v579_v16  ;;  %1183 = vmatpush1.bf16.msra.mxu1 %v579_v16  ;;  %v587_v13 = vpack.c.bf16 %v368_v1, %v366_v0  ;;  %v317_v15 = vld [vmem:[%s1834_s9 + $0x98] sm:$0xff]  ;;  %v395_v16 = vld [vmem:[%s1900_s30 + $0x8] sm:$0xff]  ;;  %v456_v35 = vmul.f32 %v375_v24, %v375_v24 }
  0x8a   : > { %v523_v31 = vadd.f32 %v522_v26, %v436_v18  ;;  %613 = vmatprep.subr.bf16.mxu0 %v582_v19  ;;  %1168 = vmatprep.subr.bf16.mxu1 %v582_v19  ;;  %v452_v18 = vmul.f32 %v371_v4, %v371_v4  ;;  %v590_v19 = vpack.c.bf16 %v373_v5, %v371_v4  ;;  %v403_v1 = vld [vmem:[%s1900_s30 + $0x48] sm:$0xff]  ;;  %v389_v10 = vld [vmem:[%s1841_s14 + $0x1d8] sm:$0xff] }
  0x8b   : > { %v486_v36 = vadd.f32 %v485_v28, %v435_v23  ;;  %v451_v23 = vmul.f32 %v370_v20, %v370_v20  ;;  %v554_v26 = vpack.c.bf16 %v301_v9, %v299_v8  ;;  %v454_v28 = vmul.f32 %v373_v5, %v373_v5  ;;  %757 = vperm.xlu0 %1332, %v395_v16   ;;  %v382_v5 = vld [vmem:[%s1841_s14 + $0x1a0] sm:$0xff]  ;;  %v387_v9 = vld [vmem:[%s1841_s14 + $0x1c8] sm:$0xff] }
  0x8c   : > { %v524_v40 = vadd.f32 %v523_v31, %v438_v27  ;;  %v453_v31 = vmul.f32 %v372_v21, %v372_v21  ;;  %v463_v8 = vmul.f32 %v382_v5, %v382_v5 }
  0x8d   : > { %v487_v42 = vadd.f32 %v486_v36, %v437_v29  ;;  %614 = vmatpush1.bf16.msra.mxu0 %v581_v30  ;;  %1184 = vmatpush1.bf16.msra.mxu1 %v581_v30  ;;  %v562_v29 = vpack.c.bf16 %v317_v15, %v315_v14  ;;  %v592_v36 = vpack.c.bf16 %v377_v25, %v375_v24 }
  0x8e   : > { %v525_v45 = vadd.f32 %v524_v40, %v440_v32  ;;  %615 = vmatprep.subr.bf16.mxu0 %v584_v33  ;;  %1169 = vmatprep.subr.bf16.mxu1 %v584_v33  ;;  %v589_v32 = vpack.c.bf16 %v372_v21, %v370_v20  ;;  %v399_v33 = vld [vmem:[%s1900_s30 + $0x28] sm:$0xff]  ;;  %v598_v20 = vpack.c.bf16 %v389_v10, %v387_v9  ;;  %v386_v21 = vld [vmem:[%s1841_s14 + $0x1c0] sm:$0xff] }
  0x8f   : > { %v488_v50 = vadd.f32 %v487_v42, %v439_v37  ;;  %v374_v37 = vld [vmem:[%s1841_s14 + $0x160] sm:$0xff]  ;;  %v381_v42 = vld [vmem:[%s1841_s14 + $0x198] sm:$0xff]  ;;  %633 = vmatprep.mubr.bf16.mxu0 %v554_v26  ;;  %673 = vmatprep.mubr.bf16.mxu1 %v562_v29  ;;  %v467_v24 = vmul.f32 %v386_v21, %v386_v21  ;;  %v404_v29 = vld [vmem:[%s1900_s30 + $0x50] sm:$0xff] }
  0x90   : > { %v526_v54 = vadd.f32 %v525_v45, %v442_v41  ;;  %v455_v40 = vmul.f32 %v374_v37, %v374_v37  ;;  %v379_v41 = vld [vmem:[%s1841_s14 + $0x188] sm:$0xff]  ;;  %769 = vperm.xlu1 %1333, %v399_v33   ;;  %v398_v45 = vld [vmem:[%s1900_s30 + $0x20] sm:$0xff]  ;;  %v591_v48 = vpack.c.bf16 %v376_v38, %v374_v37  ;;  %v462_v60 = vmul.f32 %v381_v42, %v381_v42  ;;  %v393_v26 = vld [vmem:[%s1841_s14 + $0x1f8] sm:$0xff] }
  0x91   : > { %v489_v56 = vadd.f32 %v488_v50, %v441_v43  ;;  %616 = vmatpush1.bf16.msra.mxu0 %v583_v44  ;;  %1185 = vmatpush1.bf16.msra.mxu1 %v583_v44  ;;  %v458_v44 = vmul.f32 %v377_v25, %v377_v25  ;;  %v594_v52 = vpack.c.bf16 %v381_v42, %v379_v41  ;;  %v391_v25 = vld [vmem:[%s1841_s14 + $0x1e8] sm:$0xff]  ;;  %v390_v37 = vld [vmem:[%s1841_s14 + $0x1e0] sm:$0xff] }
  0x92   : > { %v527_v61 = vadd.f32 %v526_v54, %v444_v46  ;;  %617 = vmatprep.subr.bf16.mxu0 %v586_v47  ;;  %1170 = vmatprep.subr.bf16.mxu1 %v586_v47  ;;  %v457_v47 = vmul.f32 %v376_v38, %v376_v38  ;;  %v380_v54 = vld [vmem:[%s1841_s14 + $0x190] sm:$0xff]  ;;  %v407_v33 = vld [vmem:[%s1900_s30 + $0x68] sm:$0xff] }
  0x93   : > { %v490_v2 = vadd.f32 %v489_v56, %v443_v51  ;;  %v460_v51 = vmul.f32 %v379_v41, %v379_v41  ;;  %v459_v56 = vmul.f32 %v378_v53, %v378_v53  ;;  %766 = vperm.xlu0 %1332, %v398_v45   ;;  %v593_v0 = vpack.c.bf16 %v380_v54, %v378_v53  ;;  %v392_v38 = vld [vmem:[%s1841_s14 + $0x1f0] sm:$0xff]  ;;  %v298_v41 = vld [vmem:[%s1834_s9] sm:$0xff] }
  0x94   : > { %v528_v6 = vadd.f32 %v527_v61, %v446_v55  ;;  %775 = vperm.xlu1 %1333, %v401_v49   ;;  %v400_v61 = vld [vmem:[%s1900_s30 + $0x30] sm:$0xff]  ;;  %v314_v45 = vld [vmem:[%s1834_s9 + $0x80] sm:$0xff]  ;;  %v599_v49 = vpack.c.bf16 %v392_v38, %v390_v37 }
  0x95   : > { %v491_v11 = vadd.f32 %v490_v2, %v445_v57  ;;  %618 = vmatpush1.bf16.msra.mxu0 %v585_v58  ;;  %1186 = vmatpush1.bf16.msra.mxu1 %v585_v58  ;;  %v383_v57 = vld [vmem:[%s1841_s14 + $0x1a8] sm:$0xff]  ;;  %v385_v58 = vld [vmem:[%s1841_s14 + $0x1b8] sm:$0xff] }
  0x96   : > { %v529_v17 = vadd.f32 %v528_v6, %v448_v62  ;;  %619 = vmatprep.subr.bf16.mxu0 %v588_v63  ;;  %1171 = vmatprep.subr.bf16.mxu1 %v588_v63  ;;  %v461_v63 = vmul.f32 %v380_v54, %v380_v54  ;;  %v596_v4 = vpack.c.bf16 %v385_v58, %v383_v57  ;;  %v384_v6 = vld [vmem:[%s1841_s14 + $0x1b0] sm:$0xff]  ;;  %v305_v54 = vld [vmem:[%s1834_s9 + $0x38] sm:$0xff] }
  0x97   : > { %v492_v22 = vadd.f32 %v491_v11, %v447_v3  ;;  %v464_v3 = vmul.f32 %v383_v57, %v383_v57  ;;  %772 = vperm.xlu0 %1332, %v400_v61   ;;  %v465_v15 = vmul.f32 %v384_v6, %v384_v6  ;;  %v595_v16 = vpack.c.bf16 %v384_v6, %v382_v5  ;;  %v408_v61 = vld [vmem:[%s1900_s30 + $0x70] sm:$0xff]  ;;  %v307_v5 = vld [vmem:[%s1834_s9 + $0x48] sm:$0xff]  ;;  %v309_v6 = vld [vmem:[%s1834_s9 + $0x58] sm:$0xff] }
  0x98   : > { %v530_v27 = vadd.f32 %v529_v17, %v450_v7  ;;  %781 = vperm.xlu1 %1333, %v403_v1   ;;  %v405_v17 = vld [vmem:[%s1900_s30 + $0x58] sm:$0xff]  ;;  %v302_v1 = vld [vmem:[%s1834_s9 + $0x20] sm:$0xff] }
  0x99   : > { %v493_v30 = vadd.f32 %v492_v22, %v449_v12  ;;  %620 = vmatpush1.bf16.msra.mxu0 %v587_v13  ;;  %1187 = vmatpush1.bf16.msra.mxu1 %v587_v13  ;;  %v466_v12 = vmul.f32 %v385_v58, %v385_v58  ;;  %v402_v13 = vld [vmem:[%s1900_s30 + $0x40] sm:$0xff]  ;;  %v388_v22 = vld [vmem:[%s1841_s14 + $0x1d0] sm:$0xff] }
  0x9a   : > { %v531_v34 = vadd.f32 %v530_v27, %v452_v18  ;;  %621 = vmatprep.subr.bf16.mxu0 %v590_v19  ;;  %1172 = vmatprep.subr.bf16.mxu1 %v590_v19  ;;  %v468_v19 = vmul.f32 %v387_v9, %v387_v9 }
  0x9b   : > { %v494_v39 = vadd.f32 %v493_v30, %v451_v23  ;;  %778 = vperm.xlu0 %1332, %v402_v13   ;;  %v306_v13 = vld [vmem:[%s1834_s9 + $0x40] sm:$0xff] }
  0x9c   : > { %v532_v43 = vadd.f32 %v531_v34, %v454_v28  ;;  %v470_v28 = vmul.f32 %v389_v10, %v389_v10  ;;  %787 = vperm.xlu1 %1333, %v405_v17   ;;  %v311_v17 = vld [vmem:[%s1834_s9 + $0x68] sm:$0xff] }
  0x9d   : > { %v495_v46 = vadd.f32 %v494_v39, %v453_v31  ;;  %622 = vmatpush1.bf16.msra.mxu0 %v589_v32  ;;  %1188 = vmatpush1.bf16.msra.mxu1 %v589_v32  ;;  %v469_v31 = vmul.f32 %v388_v22, %v388_v22  ;;  %v597_v32 = vpack.c.bf16 %v388_v22, %v386_v21 }
  0x9e   : > { %v533_v50 = vadd.f32 %v532_v43, %v456_v35  ;;  %623 = vmatprep.subr.bf16.mxu0 %v592_v36  ;;  %1173 = vmatprep.subr.bf16.mxu1 %v592_v36  ;;  %v472_v35 = vmul.f32 %v391_v25, %v391_v25  ;;  %v600_v36 = vpack.c.bf16 %v393_v26, %v391_v25  ;;  %v310_v25 = vld [vmem:[%s1834_s9 + $0x60] sm:$0xff] }
  0x9f   : > { %v496_v55 = vadd.f32 %v495_v46, %v455_v40  ;;  %v471_v40 = vmul.f32 %v390_v37, %v390_v37  ;;  %784 = vperm.xlu0 %1332, %v404_v29   ;;  %v474_v43 = vmul.f32 %v393_v26, %v393_v26  ;;  %v406_v46 = vld [vmem:[%s1900_s30 + $0x60] sm:$0xff]  ;;  %v312_v26 = vld [vmem:[%s1834_s9 + $0x70] sm:$0xff] }
  0xa0   : > { %v534_v59 = vadd.f32 %v533_v50, %v458_v44  ;;  %v300_v44 = vld [vmem:[%s1834_s9 + $0x10] sm:$0xff]  ;;  %793 = vperm.xlu1 %1333, %v407_v33   ;;  %v559_v29 = vpack.c.bf16 %v312_v26, %v310_v25 }
  0xa1   : > { %v497_v62 = vadd.f32 %v496_v55, %v457_v47  ;;  %624 = vmatpush1.bf16.msra.mxu0 %v591_v48  ;;  %1189 = vmatpush1.bf16.msra.mxu1 %v591_v48  ;;  %v473_v48 = vmul.f32 %v392_v38, %v392_v38  ;;  %v316_v50 = vld [vmem:[%s1834_s9 + $0x90] sm:$0xff]  ;;  %v319_v55 = vld [vmem:[%s1834_s9 + $0xa8] sm:$0xff] }
  0xa2   : > { %v535_v2 = vadd.f32 %v534_v59, %v460_v51  ;;  %625 = vmatprep.subr.bf16.mxu0 %v594_v52  ;;  %1174 = vmatprep.subr.bf16.mxu1 %v594_v52  ;;  %v303_v51 = vld [vmem:[%s1834_s9 + $0x28] sm:$0xff]  ;;  %v409_v52 = vld [vmem:[%s1900_s30 + $0x78] sm:$0xff]  ;;  %v553_v59 = vpack.c.bf16 %v300_v44, %v298_v41  ;;  %s1556_s30 = smov [#allocation8]  }
  0xa3   : > { %v498_v7 = vadd.f32 %v497_v62, %v459_v56  ;;  %v321_v56 = vld [vmem:[%s1834_s9 + $0xb8] sm:$0xff]  ;;  %790 = vperm.xlu0 %1332, %v406_v46  }
  0xa4   : > { %v536_v11 = vadd.f32 %v535_v2, %v462_v60  ;;  %v561_v60 = vpack.c.bf16 %v316_v50, %v314_v45  ;;  %799 = vperm.xlu1 %1333, %v409_v52   ;;  %v304_v2 = vld [vmem:[%s1834_s9 + $0x30] sm:$0xff] }
  0xa5   : > { %v499_v14 = vadd.f32 %v498_v7, %v461_v63  ;;  %626 = vmatpush1.bf16.msra.mxu0 %v593_v0  ;;  %1190 = vmatpush1.bf16.msra.mxu1 %v593_v0  ;;  %v556_v63 = vpack.c.bf16 %v305_v54, %v303_v51  ;;  %v564_v0 = vpack.c.bf16 %v321_v56, %v319_v55  ;;  %v323_v7 = vld [vmem:[%s1834_s9 + $0xc8] sm:$0xff]  ;;  %v750_v54 = vstv %s1118_s5  ;;  %s1402_s5 = sshll.u32 %s1556_s30, 4  ;;  %s1403_s5 = int_to_ptr.vmem [resolvable:$false] %s1402_s5 }
  0xa6   : > { %v537_v18 = vadd.f32 %v536_v11, %v464_v3  ;;  %627 = vmatprep.subr.bf16.mxu0 %v596_v4  ;;  %1175 = vmatprep.subr.bf16.mxu1 %v596_v4  ;;  %v318_v3 = vld [vmem:[%s1834_s9 + $0xa0] sm:$0xff]  ;;  %v320_v4 = vld [vmem:[%s1834_s9 + $0xb0] sm:$0xff]  ;;  %v555_v9 = vpack.c.bf16 %v304_v2, %v302_v1  ;;  %v558_v11 = vpack.c.bf16 %v309_v6, %v307_v5  ;;  %p1405_p10 = scmp.lt.s32.totalorder %s2272_s4, %s1403_s5 }
  0xa7   : > { %v500_v23 = vadd.f32 %v499_v14, %v463_v8  ;;  %796 = vperm.xlu0 %1332, %v408_v61   ;;  %v325_v8 = vld [vmem:[%s1834_s9 + $0xd8] sm:$0xff]  ;;  %v563_v10 = vpack.c.bf16 %v320_v4, %v318_v3  ;;  %v308_v14 = vld [vmem:[%s1834_s9 + $0x50] sm:$0xff] }
  0xa8   : > { %v538_v27 = vadd.f32 %v537_v18, %v466_v12  ;;  %v566_v12 = vpack.c.bf16 %v325_v8, %v323_v7  ;;  %v313_v18 = vld [vmem:[%s1834_s9 + $0x78] sm:$0xff]  ;;  %v557_v21 = vpack.c.bf16 %v308_v14, %v306_v13 }
  0xa9   : > { %v501_v30 = vadd.f32 %v500_v23, %v465_v15  ;;  %628 = vmatpush1.bf16.msra.mxu0 %v595_v16  ;;  %1191 = vmatpush1.bf16.msra.mxu1 %v595_v16  ;;  %v322_v15 = vld [vmem:[%s1834_s9 + $0xc0] sm:$0xff]  ;;  %v324_v16 = vld [vmem:[%s1834_s9 + $0xd0] sm:$0xff]  ;;  %v560_v23 = vpack.c.bf16 %v313_v18, %v311_v17 }
  0xaa   : > { %v539_v34 = vadd.f32 %v538_v27, %v468_v19  ;;  %629 = vmatprep.subr.bf16.mxu0 %v598_v20  ;;  %1176 = vmatprep.subr.bf16.mxu1 %v598_v20  ;;  %v327_v19 = vld [vmem:[%s1834_s9 + $0xe8] sm:$0xff]  ;;  %v329_v20 = vld [vmem:[%s1834_s9 + $0xf8] sm:$0xff]  ;;  %v565_v22 = vpack.c.bf16 %v324_v16, %v322_v15  ;;  %v326_v27 = vld [vmem:[%s1834_s9 + $0xe0] sm:$0xff] }
  0xab   : > { %v502_v39 = vadd.f32 %v501_v30, %v467_v24  ;;  %v568_v24 = vpack.c.bf16 %v329_v20, %v327_v19 }
  0xac   : > { %v540_v42 = vadd.f32 %v539_v34, %v470_v28  ;;  %v328_v28 = vld [vmem:[%s1834_s9 + $0xf0] sm:$0xff]  ;;  %s1153_s9 = sshll.u32 %s1536_s26, 1 }
  0xad   : > { %v503_v47 = vadd.f32 %v502_v39, %v469_v31  ;;  %630 = vmatpush1.bf16.msra.mxu0 %v597_v32  ;;  %1192 = vmatpush1.bf16.msra.mxu1 %v597_v32  ;;  %v567_v30 = vpack.c.bf16 %v328_v28, %v326_v27  ;;  %s2228_s25 = sadd.s32 %s1161_s7, %s1153_s9 }
  0xae   : > { %v541_v53 = vadd.f32 %v540_v42, %v472_v35  ;;  %631 = vmatprep.subr.bf16.mxu0 %v600_v36  ;;  %1177 = vmatprep.subr.bf16.mxu1 %v600_v36  ;;  %s1155_s26 = sshll.u32 %s2228_s25, 7 }
  0xaf   : > { %v504_v57 = vadd.f32 %v503_v47, %v471_v40  ;;  %s2268_s16 = scalar_lea.hbm %s2396_s13, %s1155_s26 }
  0xb0   : > { %v542_v58 = vadd.f32 %v541_v53, %v474_v43 }
  0xb1   : > { %v505_v62 = vadd.f32 %v504_v57, %v473_v48  ;;  %632 = vmatpush1.bf16.msra.mxu0 %v599_v49  ;;  %1193 = vmatpush1.bf16.msra.mxu1 %v599_v49  ;;  %v747_v48 = vlaneseq }
  0xb2   : > { %v543_v32 = vrot.slane %v542_v58, 4 }
  0xb3   : > { %v506_v31 = vrot.slane %v505_v62, 4  ;;  %v748_v52 = vand.u32 127, %v747_v48 }
  0xb4   : > { %634 = vmatmul.mubr.bf16.vlgmr.msra.gmra.mrb[0].mxu0 %v553_v59  ;;  %674 = vmatmul.mubr.bf16.vlgmr.msra.gmra.mrb[0].mxu1 %v561_v60  ;;  %v544_v34 = vadd.f32 %v543_v32, %v542_v58 }
  0xb5   : > { %643 = vmatprep.mubr.bf16.mxu0 %v556_v63  ;;  %683 = vmatprep.mubr.bf16.mxu1 %v564_v0  ;;  %v507_v33 = vadd.f32 %v506_v31, %v505_v62  ;;  %v749_v53 = vadd.s32 128, %v748_v52  ;;  %v1995_v57 = vadd.s32 %v750_v54, %v748_v52  ;;  %v2012_v0 = vstv %s410_s20  ;;  %s1404_s20 = scalar_lea.vmem %s1403_s5, 8192 }
  0xb6   : > { %v545_v36 = vrot.slane %v544_v34, 2  ;;  %p1406_p6 = scmp.lt.s32.totalorder %s1404_s20, %s1398_s11 }
  0xb7   : > { %v508_v35 = vrot.slane %v507_v33, 2  ;;  %v1997_v58 = vadd.s32 %v750_v54, %v749_v53 }
  0xb8   : > { %v546_v38 = vadd.f32 %v545_v36, %v544_v34  ;;  %p1407_p7 = por %p1406_p6, %p1405_p10 }
  0xb9   : > { %v509_v37 = vadd.f32 %v508_v35, %v507_v33 }
  0xba   : > { %v547_v42 = vrot.slane %v546_v38, 1  ;;  %p1408_p2 = pnand %p1407_p7, %p1401_p0 }
  0xbb   : > { %v510_v41 = vrot.slane %v509_v37, 1 }
  0xbc   : > { %644 = vmatmul.mubr.bf16.gmra.mrb[4].mxu0 %v555_v9  ;;  %684 = vmatmul.mubr.bf16.gmra.mrb[4].mxu1 %v563_v10  ;;  %v548_v44 = vadd.f32 %v547_v42, %v546_v38 }
  0xbd   : > { %653 = vmatprep.mubr.bf16.mxu0 %v558_v11  ;;  %693 = vmatprep.mubr.bf16.mxu1 %v566_v12  ;;  %v511_v43 = vadd.f32 %v510_v41, %v509_v37 }
  0xbe   : > { %v550_v49 = vmax.f32 %v548_v44, 1e-24 }
  0xbf   : > { %v549_v47 = vmax.f32 %v511_v43, 1e-24 }
  0xc1   : > { %1334 = vrsqrt.f32 %v549_v47 }
  0xc2   : > { %1336 = vrsqrt.f32 %v550_v49 }
  0xc4   : > { %654 = vmatmul.mubr.bf16.gmra.mrb[8].mxu0 %v557_v21  ;;  %694 = vmatmul.mubr.bf16.gmra.mrb[8].mxu1 %v565_v22 }
  0xc5   : > { %663 = vmatprep.mubr.bf16.mxu0 %v560_v23  ;;  %703 = vmatprep.mubr.bf16.mxu1 %v568_v24 }
  0xcb   : > { %v1999_v59 = vpop.eup %1334 }
  0xcc   : > { %664 = vmatmul.mubr.bf16.gmra.mrb[12].mxu0 %v559_v29  ;;  %704 = vmatmul.mubr.bf16.gmra.mrb[12].mxu1 %v567_v30  ;;  %v2001_v60 = vpop.eup %1336 }
  0xff   : > { %v1980_v40 = vpop.permute.xlu0 %754 }
 0x100   : > { %vm801_vm0 = vcmp.eq.s32.totalorder %v1995_v57, %v1980_v40  ;;  %vm802_vm1 = vcmp.eq.s32.totalorder %v1997_v58, %v1980_v40 }
 0x103   : > { %v1978_v39 = vpop.permute.xlu1 %760 }
 0x104   : > { %vm805_vm8 = vcmp.eq.s32.totalorder %v1995_v57, %v1978_v39  ;;  %vm806_vm9 = vcmp.eq.s32.totalorder %v1997_v58, %v1978_v39 }
 0x107   : > { %v1982_v45 = vpop.permute.xlu1 %763 }
 0x108   : > { %vm807_vm10 = vcmp.eq.s32.totalorder %v1995_v57, %v1982_v45  ;;  %vm808_vm12 = vcmp.eq.s32.totalorder %v1997_v58, %v1982_v45 }
 0x10a   : > { %v1984_v46 = vpop.permute.xlu0 %757 }
 0x10b   : > { %vm803_vm2 = vcmp.eq.s32.totalorder %v1995_v57, %v1984_v46  ;;  %vm804_vm3 = vcmp.eq.s32.totalorder %v1997_v58, %v1984_v46 }
 0x10f   : > { %v1986_v50 = vpop.permute.xlu1 %769 }
 0x112   : > { %v1988_v51 = vpop.permute.xlu0 %766 }
 0x113   : > { %v1991_v55 = vpop.permute.xlu1 %775 }
 0x116   : > { %v1993_v56 = vpop.permute.xlu0 %772 }
 0x117   : > { %v2003_v61 = vpop.permute.xlu1 %781 }
 0x118   : > { %vm819_vm4 = vcmp.eq.s32.totalorder %v1995_v57, %v2003_v61  ;;  %vm820_vm5 = vcmp.eq.s32.totalorder %v1997_v58, %v2003_v61 }
 0x11a   : > { %v779_v62 = vpop.permute.xlu0 %778 }
 0x11b   : > { %vm817_vm6 = vcmp.eq.s32.totalorder %v1995_v57, %v779_v62  ;;  %vm818_vm7 = vcmp.eq.s32.totalorder %v1997_v58, %v779_v62  ;;  %v2050_v28 = vpop.permute.xlu1 %787 }
 0x11c   : > { %vm823_vm11 = vcmp.eq.s32.totalorder %v1995_v57, %v2050_v28  ;;  %vm824_vm13 = vcmp.eq.s32.totalorder %v1997_v58, %v2050_v28 }
 0x11e   : > { %v785_v29 = vpop.permute.xlu0 %784 }
 0x11f   : > { %vm821_vm14 = vcmp.eq.s32.totalorder %v1995_v57, %v785_v29  ;;  %vm822_vm15 = vcmp.eq.s32.totalorder %v1997_v58, %v785_v29 }
 0x187   : > { %v635_v63 = vpop.f32.mrb[0].mxu0  ;;  %v675_v1 = vpop.f32.mrb[0].mxu1 }
 0x188   : > { %v714_v2 = vmul.f32 %v1999_v59, %v635_v63  ;;  %v730_v3 = vmul.f32 %v1999_v59, %v675_v1  ;;  %v637_v4 = vpop.f32.mrb[1].mxu0  ;;  %v677_v5 = vpop.f32.mrb[1].mxu1 }
 0x189   : > { %v715_v6 = vmul.f32 %v2001_v60, %v637_v4  ;;  %v731_v7 = vmul.f32 %v2001_v60, %v677_v5  ;;  %v639_v8 = vpop.f32.mrb[2].mxu0  ;;  %v679_v9 = vpop.f32.mrb[2].mxu1 }
 0x18a   : > { %v1119_v10 = vadd.f32 -0.35, %v714_v2  ;;  %v1135_v11 = vadd.f32 -0.35, %v730_v3  ;;  %v716_v12 = vmul.f32 %v1999_v59, %v639_v8  ;;  %v732_v13 = vmul.f32 %v1999_v59, %v679_v9  ;;  %v641_v14 = vpop.f32.mrb[3].mxu0  ;;  %v681_v15 = vpop.f32.mrb[3].mxu1 }
 0x18b   : > { %v1120_v16 = vadd.f32 -0.35, %v715_v6  ;;  %v1136_v17 = vadd.f32 -0.35, %v731_v7  ;;  %v717_v18 = vmul.f32 %v2001_v60, %v641_v14  ;;  %v733_v19 = vmul.f32 %v2001_v60, %v681_v15  ;;  %v2115_v15 = vpop.permute.xlu1 %793 }
 0x18c   : > { %v865_v20 = vsel %vm801_vm0, %v1119_v10, %v714_v2  ;;  %v881_v21 = vsel %vm817_vm6, %v1135_v11, %v730_v3  ;;  %v1121_v22 = vadd.f32 -0.35, %v716_v12  ;;  %v1137_v23 = vadd.f32 -0.35, %v732_v13 }
 0x18d   : > { %v898_v24 = vmul.f32 %v2012_v0, %v865_v20  ;;  %v914_v25 = vmul.f32 %v2012_v0, %v881_v21  ;;  %v866_v26 = vsel %vm802_vm1, %v1120_v16, %v715_v6  ;;  %v882_v27 = vsel %vm818_vm7, %v1136_v17, %v731_v7  ;;  %v2117_v16 = vpop.permute.xlu0 %790 }
 0x18e   : > { %v899_v30 = vmul.f32 %v2012_v0, %v866_v26  ;;  %v915_v31 = vmul.f32 %v2012_v0, %v882_v27  ;;  %v867_v32 = vsel %vm803_vm2, %v1121_v22, %v716_v12  ;;  %v883_v33 = vsel %vm819_vm4, %v1137_v23, %v732_v13 }
 0x18f   : > { %930 = vst [vmem:[%s2065_s12] sm:$0xff] %v898_v24  ;;  %946 = vst [vmem:[%s2065_s12 + $0x80] sm:$0xff] %v914_v25  ;;  %v900_v34 = vmul.f32 %v2012_v0, %v867_v32  ;;  %v916_v35 = vmul.f32 %v2012_v0, %v883_v33  ;;  %v1122_v36 = vadd.f32 -0.35, %v717_v18  ;;  %v1138_v37 = vadd.f32 -0.35, %v733_v19  ;;  %v645_v38 = vpop.f32.mrb[4].mxu0 }
 0x190   : > { %v685_v40 = vpop.f32.mrb[4].mxu1  ;;  %931 = vst [vmem:[%s2065_s12 + $0x8] sm:$0xff] %v899_v30  ;;  %947 = vst [vmem:[%s2065_s12 + $0x88] sm:$0xff] %v915_v31  ;;  %v718_v41 = vmul.f32 %v1999_v59, %v645_v38  ;;  %v647_v43 = vpop.f32.mrb[5].mxu0  ;;  %vm809_vm0 = vcmp.eq.s32.totalorder %v1995_v57, %v1988_v51  ;;  %vm810_vm1 = vcmp.eq.s32.totalorder %v1997_v58, %v1988_v51 }
 0x191   : > { %v734_v42 = vmul.f32 %v1999_v59, %v685_v40  ;;  %v687_v44 = vpop.f32.mrb[5].mxu1  ;;  %932 = vst [vmem:[%s2065_s12 + $0x10] sm:$0xff] %v900_v34  ;;  %948 = vst [vmem:[%s2065_s12 + $0x90] sm:$0xff] %v916_v35  ;;  %v868_v47 = vsel %vm804_vm3, %v1122_v36, %v717_v18  ;;  %v884_v48 = vsel %vm820_vm5, %v1138_v37, %v733_v19  ;;  %v649_v53 = vpop.f32.mrb[6].mxu0 }
 0x192   : > { %v719_v49 = vmul.f32 %v2001_v60, %v647_v43  ;;  %v735_v52 = vmul.f32 %v2001_v60, %v687_v44  ;;  %v689_v54 = vpop.f32.mrb[6].mxu1  ;;  %v901_v62 = vmul.f32 %v2012_v0, %v868_v47  ;;  %v917_v63 = vmul.f32 %v2012_v0, %v884_v48  ;;  %v651_v46 = vpop.f32.mrb[7].mxu0 }
 0x193   : > { %v1123_v1 = vadd.f32 -0.35, %v718_v41  ;;  %v1139_v2 = vadd.f32 -0.35, %v734_v42  ;;  %v691_v3 = vpop.f32.mrb[7].mxu1  ;;  %v720_v5 = vmul.f32 %v1999_v59, %v649_v53  ;;  %v736_v6 = vmul.f32 %v1999_v59, %v689_v54  ;;  %v2159_v48 = vpop.permute.xlu1 %799 }
 0x194   : > { %v1124_v61 = vadd.f32 -0.35, %v719_v49  ;;  %v1140_v4 = vadd.f32 -0.35, %v735_v52  ;;  %933 = vst [vmem:[%s2065_s12 + $0x18] sm:$0xff] %v901_v62  ;;  %949 = vst [vmem:[%s2065_s12 + $0x98] sm:$0xff] %v917_v63  ;;  %v721_v9 = vmul.f32 %v2001_v60, %v651_v46  ;;  %v737_v10 = vmul.f32 %v2001_v60, %v691_v3 }
 0x195   : > { %v869_v7 = vsel %vm805_vm8, %v1123_v1, %v718_v41  ;;  %v885_v8 = vsel %vm821_vm14, %v1139_v2, %v734_v42  ;;  %v1125_v19 = vadd.f32 -0.35, %v720_v5  ;;  %v1141_v20 = vadd.f32 -0.35, %v736_v6 }
 0x196   : > { %v902_v11 = vmul.f32 %v2012_v0, %v869_v7  ;;  %v918_v12 = vmul.f32 %v2012_v0, %v885_v8  ;;  %v870_v13 = vsel %vm806_vm9, %v1124_v61, %v719_v49  ;;  %v886_v14 = vsel %vm822_vm15, %v1140_v4, %v735_v52  ;;  %v2161_v49 = vpop.permute.xlu0 %796 }
 0x197   : > { %v903_v17 = vmul.f32 %v2012_v0, %v870_v13  ;;  %v919_v18 = vmul.f32 %v2012_v0, %v886_v14  ;;  %vm811_vm2 = vcmp.eq.s32.totalorder %v1995_v57, %v1986_v50  ;;  %vm827_vm3 = vcmp.eq.s32.totalorder %v1995_v57, %v2115_v15  ;;  %v655_v22 = vpop.f32.mrb[8].mxu0  ;;  %v695_v23 = vpop.f32.mrb[8].mxu1 }
 0x198   : > { %vm825_vm4 = vcmp.eq.s32.totalorder %v1995_v57, %v2117_v16  ;;  %934 = vst [vmem:[%s2065_s12 + $0x20] sm:$0xff] %v902_v11  ;;  %950 = vst [vmem:[%s2065_s12 + $0xa0] sm:$0xff] %v918_v12  ;;  %v1126_v39 = vadd.f32 -0.35, %v721_v9  ;;  %v1142_v21 = vadd.f32 -0.35, %v737_v10  ;;  %vm812_vm5 = vcmp.eq.s32.totalorder %v1997_v58, %v1986_v50 }
 0x199   : > { %vm828_vm6 = vcmp.eq.s32.totalorder %v1997_v58, %v2115_v15  ;;  %935 = vst [vmem:[%s2065_s12 + $0x28] sm:$0xff] %v903_v17  ;;  %951 = vst [vmem:[%s2065_s12 + $0xa8] sm:$0xff] %v919_v18  ;;  %v871_v24 = vsel %vm807_vm10, %v1125_v19, %v720_v5  ;;  %v887_v25 = vsel %vm823_vm11, %v1141_v20, %v736_v6  ;;  %v657_v29 = vpop.f32.mrb[9].mxu0  ;;  %v697_v30 = vpop.f32.mrb[9].mxu1 }
 0x19a   : > { %v722_v26 = vmul.f32 %v1999_v59, %v655_v22  ;;  %v738_v27 = vmul.f32 %v1999_v59, %v695_v23  ;;  %v904_v31 = vmul.f32 %v2012_v0, %v871_v24  ;;  %v920_v32 = vmul.f32 %v2012_v0, %v887_v25  ;;  %v659_v35 = vpop.f32.mrb[10].mxu0  ;;  %v699_v36 = vpop.f32.mrb[10].mxu1 }
 0x19b   : > { %v872_v33 = vsel %vm808_vm12, %v1126_v39, %v721_v9  ;;  %v888_v34 = vsel %vm824_vm13, %v1142_v21, %v737_v10  ;;  %v661_v42 = vpop.f32.mrb[11].mxu0  ;;  %v701_v43 = vpop.f32.mrb[11].mxu1  ;;  %v723_v45 = vmul.f32 %v2001_v60, %v657_v29  ;;  %v739_v44 = vmul.f32 %v2001_v60, %v697_v30 }
 0x19c   : > { %v905_v37 = vmul.f32 %v2012_v0, %v872_v33  ;;  %v921_v38 = vmul.f32 %v2012_v0, %v888_v34  ;;  %v1127_v40 = vadd.f32 -0.35, %v722_v26  ;;  %v1143_v41 = vadd.f32 -0.35, %v738_v27  ;;  %936 = vst [vmem:[%s2065_s12 + $0x30] sm:$0xff] %v904_v31  ;;  %952 = vst [vmem:[%s2065_s12 + $0xb0] sm:$0xff] %v920_v32 }
 0x19d   : > { %v724_v28 = vmul.f32 %v1999_v59, %v659_v35  ;;  %v740_v47 = vmul.f32 %v1999_v59, %v699_v36  ;;  %v725_v54 = vmul.f32 %v2001_v60, %v661_v42  ;;  %v741_v62 = vmul.f32 %v2001_v60, %v701_v43 }
 0x19e   : > { %937 = vst [vmem:[%s2065_s12 + $0x38] sm:$0xff] %v905_v37  ;;  %953 = vst [vmem:[%s2065_s12 + $0xb8] sm:$0xff] %v921_v38  ;;  %v873_v52 = vsel %vm809_vm0, %v1127_v40, %v722_v26  ;;  %v889_v53 = vsel %vm825_vm4, %v1143_v41, %v738_v27  ;;  %vm813_vm7 = vcmp.eq.s32.totalorder %v1995_v57, %v1993_v56  ;;  %v1128_v2 = vadd.f32 -0.35, %v723_v45 }
 0x19f   : > { %v906_v63 = vmul.f32 %v2012_v0, %v873_v52  ;;  %v922_v1 = vmul.f32 %v2012_v0, %v889_v53  ;;  %v1144_v46 = vadd.f32 -0.35, %v739_v44  ;;  %vm814_vm8 = vcmp.eq.s32.totalorder %v1997_v58, %v1993_v56  ;;  %v665_v8 = vpop.f32.mrb[12].mxu0  ;;  %v705_v9 = vpop.f32.mrb[12].mxu1 }
 0x1a0   : > { %vm826_vm9 = vcmp.eq.s32.totalorder %v1997_v58, %v2117_v16  ;;  %v1129_v3 = vadd.f32 -0.35, %v724_v28  ;;  %v1145_v61 = vadd.f32 -0.35, %v740_v47  ;;  %v1130_v4 = vadd.f32 -0.35, %v725_v54 }
 0x1a1   : > { %vm815_vm10 = vcmp.eq.s32.totalorder %v1995_v57, %v1991_v55  ;;  %vm831_vm11 = vcmp.eq.s32.totalorder %v1995_v57, %v2159_v48  ;;  %vm829_vm12 = vcmp.eq.s32.totalorder %v1995_v57, %v2161_v49  ;;  %938 = vst [vmem:[%s2065_s12 + $0x40] sm:$0xff] %v906_v63  ;;  %954 = vst [vmem:[%s2065_s12 + $0xc0] sm:$0xff] %v922_v1  ;;  %v1146_v7 = vadd.f32 -0.35, %v741_v62  ;;  %v667_v13 = vpop.f32.mrb[13].mxu0  ;;  %v707_v14 = vpop.f32.mrb[13].mxu1 }
 0x1a2   : > { %v874_v5 = vsel %vm810_vm1, %v1128_v2, %v723_v45  ;;  %v890_v6 = vsel %vm826_vm9, %v1144_v46, %v739_v44  ;;  %vm816_vm13 = vcmp.eq.s32.totalorder %v1997_v58, %v1991_v55  ;;  %v875_v51 = vsel %vm811_vm2, %v1129_v3, %v724_v28  ;;  %v669_v20 = vpop.f32.mrb[14].mxu0  ;;  %v709_v39 = vpop.f32.mrb[14].mxu1 }
 0x1a3   : > { %v907_v10 = vmul.f32 %v2012_v0, %v874_v5  ;;  %v923_v11 = vmul.f32 %v2012_v0, %v890_v6  ;;  %v891_v12 = vsel %vm827_vm3, %v1145_v61, %v740_v47  ;;  %v908_v16 = vmul.f32 %v2012_v0, %v875_v51  ;;  %v671_v24 = vpop.f32.mrb[15].mxu0  ;;  %v711_v25 = vpop.f32.mrb[15].mxu1 }
 0x1a4   : > { %v924_v17 = vmul.f32 %v2012_v0, %v891_v12  ;;  %v876_v18 = vsel %vm812_vm5, %v1130_v4, %v725_v54  ;;  %v892_v19 = vsel %vm828_vm6, %v1146_v7, %v741_v62  ;;  %v726_v50 = vmul.f32 %v1999_v59, %v665_v8 }
 0x1a5   : > { %939 = vst [vmem:[%s2065_s12 + $0x48] sm:$0xff] %v907_v10  ;;  %955 = vst [vmem:[%s2065_s12 + $0xc8] sm:$0xff] %v923_v11  ;;  %v909_v21 = vmul.f32 %v2012_v0, %v876_v18  ;;  %v925_v22 = vmul.f32 %v2012_v0, %v892_v19  ;;  %v742_v23 = vmul.f32 %v1999_v59, %v705_v9 }
 0x1a6   : > { %940 = vst [vmem:[%s2065_s12 + $0x50] sm:$0xff] %v908_v16  ;;  %956 = vst [vmem:[%s2065_s12 + $0xd0] sm:$0xff] %v924_v17  ;;  %v727_v15 = vmul.f32 %v2001_v60, %v667_v13  ;;  %v743_v26 = vmul.f32 %v2001_v60, %v707_v14  ;;  %v728_v27 = vmul.f32 %v1999_v59, %v669_v20  ;;  %v1131_v30 = vadd.f32 -0.35, %v726_v50 }
 0x1a7   : > { %v744_v29 = vmul.f32 %v1999_v59, %v709_v39  ;;  %941 = vst [vmem:[%s2065_s12 + $0x58] sm:$0xff] %v909_v21  ;;  %957 = vst [vmem:[%s2065_s12 + $0xd8] sm:$0xff] %v925_v22  ;;  %v1147_v31 = vadd.f32 -0.35, %v742_v23  ;;  %v729_v32 = vmul.f32 %v2001_v60, %v671_v24  ;;  %v745_v33 = vmul.f32 %v2001_v60, %v711_v25 }
 0x1a8   : > { %vm830_vm14 = vcmp.eq.s32.totalorder %v1997_v58, %v2161_v49  ;;  %v1132_v34 = vadd.f32 -0.35, %v727_v15  ;;  %v1148_v35 = vadd.f32 -0.35, %v743_v26  ;;  %v1133_v36 = vadd.f32 -0.35, %v728_v27 }
 0x1a9   : > { %v877_v59 = vsel %vm813_vm7, %v1131_v30, %v726_v50  ;;  %v893_v60 = vsel %vm829_vm12, %v1147_v31, %v742_v23  ;;  %v1149_v37 = vadd.f32 -0.35, %v744_v29  ;;  %v1134_v38 = vadd.f32 -0.35, %v729_v32 }
 0x1aa   : > { %v910_v40 = vmul.f32 %v2012_v0, %v877_v59  ;;  %v926_v41 = vmul.f32 %v2012_v0, %v893_v60  ;;  %v878_v42 = vsel %vm814_vm8, %v1132_v34, %v727_v15  ;;  %v894_v43 = vsel %vm830_vm14, %v1148_v35, %v743_v26 }
 0x1ab   : > { %v911_v45 = vmul.f32 %v2012_v0, %v878_v42  ;;  %v927_v44 = vmul.f32 %v2012_v0, %v894_v43  ;;  %v879_v28 = vsel %vm815_vm10, %v1133_v36, %v728_v27  ;;  %v895_v47 = vsel %vm831_vm11, %v1149_v37, %v744_v29 }
 0x1ac   : > { %942 = vst [vmem:[%s2065_s12 + $0x60] sm:$0xff] %v910_v40  ;;  %958 = vst [vmem:[%s2065_s12 + $0xe0] sm:$0xff] %v926_v41  ;;  %v912_v56 = vmul.f32 %v2012_v0, %v879_v28  ;;  %v928_v49 = vmul.f32 %v2012_v0, %v895_v47  ;;  %v880_v52 = vsel %vm816_vm13, %v1134_v38, %v729_v32  ;;  %v1150_v53 = vadd.f32 -0.35, %v745_v33 }
 0x1ad   : > { %vm832_vm15 = vcmp.eq.s32.totalorder %v1997_v58, %v2159_v48  ;;  %943 = vst [vmem:[%s2065_s12 + $0x68] sm:$0xff] %v911_v45  ;;  %959 = vst [vmem:[%s2065_s12 + $0xe8] sm:$0xff] %v927_v44  ;;  %v913_v57 = vmul.f32 %v2012_v0, %v880_v52 }
 0x1ae   : > { %944 = vst [vmem:[%s2065_s12 + $0x70] sm:$0xff] %v912_v56  ;;  %960 = vst [vmem:[%s2065_s12 + $0xf0] sm:$0xff] %v928_v49  ;;  %v896_v54 = vsel %vm832_vm15, %v1150_v53, %v745_v33 }
 0x1af   : > { %945 = vst [vmem:[%s2065_s12 + $0x78] sm:$0xff] %v913_v57  ;;  %v929_v55 = vmul.f32 %v2012_v0, %v896_v54 }
 0x1b1   : > { %961 = vst [vmem:[%s2065_s12 + $0xf8] sm:$0xff] %v929_v55 }
 0x1b2   : > { %1411 = shalt.err (!%p1408_p2)
}
 0x1b3   : > { %s1412_s15 = scalar_lea.hbm %s2268_s16, 4096  ;;  %s1416_s9 = scalar_lea.hbm %s2396_s13, 16384 }
 0x1b4   : > { %p1413_p9 = scmp.ne.s32.totalorder %s2268_s16, %s1412_s15  ;;  %p1417_p12 = scmp.lt.u32.totalorder %s2268_s16, %s2396_s13 }
 0x1b5   : > { %p1418_p13 = scmp.lt.u32.totalorder %s1416_s9, %s1412_s15  ;;  %p1420_p1 = scmp.lt.u32.totalorder %s1412_s15, %s2268_s16 }
 0x1b6   : > { %p1414_p4 = pnand %p1413_p9, %p2397_p8 }
 0x1b7   : > { %p1419_p3 = por %p1418_p13, %p1417_p12 }
 0x1b8   : > { %p1415_p5 = pneg %p1414_p4 }
 0x1b9   : > { %p1421_p11 = por %p1420_p1, %p1419_p3 }
 0x1bb   : > { %p1422_p0 = pnand %p1421_p11, %p1415_p5 }
 0x1bd   : > { %1425 = shalt.err (!%p1422_p0)
}
 0x1be   : > { %s1557_s26 = smov 256   ;;  %s1558_s14 = smov 512  }
 0x1bf   : > { %s1559_s0 = smov 16  }
 0x1c0   : > { %1198 = dma.vmem_to_hbm [thread:$0]  (%p2397_p8), %s2272_s4, 4096, %s2268_s16, %s2279_s27, %s1557_s26, %s1558_s14, %s1559_s0  }
 0x1c1 PF: > { %p1212_p10 = scmp.ge.s32.totalorder %s1548_s29, 2  ;;  %s994_s11 = sand.u32 1, %s1496_s17  }
 0x1c2   : > { %p2398_p6 = scmp.ne.s32.totalorder %s2382_s6, 0  ;;  %s995_s30 = scalar_lea.sflag [#allocation5], %s994_s11 }
 0x1c4   : > { %p1208_p7 = pnand %p1212_p10, %p2398_p6 }
 0x1c6   : > { %1491 = dma.done.wait (!%p1208_p7), %s995_s30, 4096  }
 0x1c7   : > { %1493 = vsyncadd (!%p1208_p7), %s995_s30, 4294963200  ;;  %s24_s29 = sadd.s32 1, %s1548_s29   ;;  %s2400_s8 = sld [smem:[#allocation16_spill]] }
 0x1c8   : > { %p2308_p2 = scmp.ge.s32.totalorder %s24_s29, 6   ;;  %s2401_s4 = sld [smem:[#allocation15_spill]] }
 0x1c9   : > { %s2402_s25 = sld [smem:[#allocation12_spill]]  ;;  %s2403_s27 = sld [smem:[#allocation13_spill]] }
 0x1ca   : > { %s2404_s6 = sld [smem:[#allocation14_spill]]  ;;  %s2405_s17 = smov %s1500_s18 }
 0x1cb   : > { %s2406_s18 = smov %s1504_s19  ;;  %s2408_s20 = smov %s1512_s21 }
 0x1cc   : > { %s2409_s21 = smov %s1516_s22  ;;  %s2410_s22 = smov %s1772_s10 }
 0x1cd   : > { %s2407_s19 = smov %s2400_s8  ;;  %s2411_s23 = smov %s1524_s3 }
 0x1ce   : > { %s2412_s3 = smov %s1528_s24  ;;  %s2413_s24 = smov %s2401_s4 }
 0x1cf   : > { %s2414_s26 = smov %s1544_s28  ;;  %23 = sbr.rel (!%p2308_p2) target bundleno = 16 (0x10), region = 97 }
 0x1d0   : > { %s2415_s28 = smov %s2404_s6 }
 0x1d6   :  { %1000 = vsyncpa [#allocation4], 1 }
 0x1d7   :  { %1002 = vsyncpa [#allocation4 + $0x1], 1 }
 0x1d8   :  { %1003 = vsyncpa [#allocation7], 1 }
 0x1d9   :  { %1005 = vsyncpa [#allocation7 + $0x1], 1 }
 0x1da   :  { %1006 = vsyncpa [#allocation5], 1 }
 0x1db   :  { %1008 = vsyncpa [#allocation5 + $0x1], 1 }

</bundles_post_ra>
